<compile_context>
chip_gen: v6e
topology: v6e:2x2x1
jax: 0.10.0
libtpu: 0.0.40
codegen_flags: <defaults>
</compile_context>

<pallas_src>
import jax
import jax.numpy as jnp
from jax.experimental import pallas as pl
from jax.experimental.pallas import tpu as pltpu


_MAX_BLOCK_BYTES = 4 * 1024 * 1024   # ~4 MiB streaming tiles
_VMEM_LIMIT = 40 * 1024 * 1024       # in+out double buffers << 64 MiB (v7x)


def _identity_kernel(x_ref, o_ref):
    # Straight VMEM load -> VMEM store of the current tile.
    o_ref[...] = x_ref[...]


def _pick_lane(total):
    """Largest lane width (multiple of 128) dividing `total`, capped at 4096."""
    for cand in (4096, 2048, 1024, 512, 256, 128):
        if total % cand == 0:
            return cand
    return None


def _copy_2d(x2d, sublane):
    """Streaming copy of a lane-dense (rows, lane) slab; partial tail is masked."""
    rows, lane = x2d.shape
    itemsize = jnp.dtype(x2d.dtype).itemsize
    target_rows = max(sublane, _MAX_BLOCK_BYTES // (lane * itemsize))

    if rows <= sublane:
        tile_rows = rows  # single full-extent block (exempt from (8,128) rule)
    else:
        tile_rows = min(rows, target_rows)
        tile_rows = max(sublane, (tile_rows // sublane) * sublane)
        # v7x megacore: make sure the parallel grid has >= 2 steps when possible.
        if pl.cdiv(rows, tile_rows) < 2 and rows >= 2 * sublane:
            tile_rows = max(sublane, ((rows // 2) // sublane) * sublane)

    grid = (pl.cdiv(rows, tile_rows),)
    return pl.pallas_call(
        _identity_kernel,
        out_shape=jax.ShapeDtypeStruct((rows, lane), x2d.dtype),
        grid_spec=pltpu.PrefetchScalarGridSpec(
            num_scalar_prefetch=0,
            grid=grid,
            in_specs=[pl.BlockSpec((tile_rows, lane), lambda i: (i, 0))],
            out_specs=pl.BlockSpec((tile_rows, lane), lambda i: (i, 0)),
        ),
        compiler_params=pltpu.CompilerParams(
            dimension_semantics=("parallel",),
            vmem_limit_bytes=_VMEM_LIMIT,
        ),
        cost_estimate=pl.CostEstimate(
            flops=0, transcendentals=0,
            bytes_accessed=2 * rows * lane * itemsize),
    )(x2d)


def _copy_1d(flat):
    """Fallback for element counts not divisible by 128: masked-tail 1-D copy."""
    (n,) = flat.shape
    itemsize = jnp.dtype(flat.dtype).itemsize
    block = max(1024, ((_MAX_BLOCK_BYTES // itemsize) // 1024) * 1024)
    if n <= block:
        block = n  # single full-extent block (exempt from the 128 rule)
    grid = (pl.cdiv(n, block),)
    return pl.pallas_call(
        _identity_kernel,
        out_shape=jax.ShapeDtypeStruct((n,), flat.dtype),
        grid_spec=pltpu.PrefetchScalarGridSpec(
            num_scalar_prefetch=0,
            grid=grid,
            in_specs=[pl.BlockSpec((block,), lambda i: (i,))],
            out_specs=pl.BlockSpec((block,), lambda i: (i,)),
        ),
        compiler_params=pltpu.CompilerParams(
            dimension_semantics=("parallel",),
            vmem_limit_bytes=_VMEM_LIMIT,
        ),
        cost_estimate=pl.CostEstimate(
            flops=0, transcendentals=0, bytes_accessed=2 * n * itemsize),
    )(flat)


def _mine_identity_impl(x):
    orig_shape = x.shape
    total = x.size
    itemsize = jnp.dtype(x.dtype).itemsize
    # Sublane packing: 8 rows for 32-bit, 16 for bf16, 32 for int8/fp8.
    sublane = 8 * max(1, 4 // itemsize)

    # Fast path: native shape already lane/sublane aligned -> collapsing the
    # leading dims into the sublane axis is a layout-preserving (free) reshape.
    if (x.ndim >= 2
            and x.shape[-1] % 128 == 0
            and x.shape[-2] % sublane == 0
            and x.shape[-1] * sublane * itemsize <= _MAX_BLOCK_BYTES):
        lane = x.shape[-1]
        out2d = _copy_2d(x.reshape(total // lane, lane), sublane)
        return out2d.reshape(orig_shape)

    # Lane-dense flat path: element count is a multiple of 128.
    lane = _pick_lane(total)
    if lane is not None:
        out2d = _copy_2d(x.reshape(total // lane, lane), sublane)
        return out2d.reshape(orig_shape)

    # Awkward sizes: 1-D copy with a masked partial tail (no pad / no slice).
    out1d = _copy_1d(x.reshape(total))
    return out1d.reshape(orig_shape)


_mine_identity_jit = jax.jit(_mine_identity_impl)


def mine_identity_forward(x):
    """Identity: returns x (same shape, dtype, values) via a Pallas copy kernel."""
    if x.size == 0 or x.ndim == 0:
        return x  # nothing to copy / scalar: the identity is trivially x itself
    return _mine_identity_jit(x)


if __name__ == "__main__":
    key = jax.random.PRNGKey(0)
    # Small NCHW-style input consistent with the module: (batch=2, C=4, H=16, W=16).
    x = jax.random.normal(key, (2, 4, 16, 16), dtype=jnp.float32)

    y = mine_identity_forward(x)
    jax.block_until_ready(y)
    assert y.shape == x.shape
    assert y.dtype == x.dtype
    assert bool(jnp.all(y == x))

    # Robustness check: non-128-divisible element count + packed (bf16) dtype.
    x2 = jax.random.normal(jax.random.PRNGKey(0), (3, 5, 7), dtype=jnp.float32)
    x2 = x2.astype(jnp.bfloat16)
    y2 = mine_identity_forward(x2)
    jax.block_until_ready(y2)
    assert y2.shape == x2.shape
    assert y2.dtype == x2.dtype
    assert bool(jnp.all(y2 == x2))

    # Lane-friendly fast path (last dim % 128 == 0, sublane-aligned rows).
    x3 = jax.random.normal(jax.random.PRNGKey(0), (2, 8, 256), dtype=jnp.float32)
    y3 = mine_identity_forward(x3)
    jax.block_until_ready(y3)
    assert y3.shape == x3.shape and y3.dtype == x3.dtype
    assert bool(jnp.all(y3 == x3))

    print("KERNEL_OK")
</pallas_src>

<mosaic_0001>
module attributes {stable_mosaic.version = 11 : i64} {
  func.func @_identity_kernel(%arg0: i32, %arg1: memref<1x2048xf32, #tpu.memory_space<vmem>>, %arg2: memref<1x2048xf32, #tpu.memory_space<vmem>>) attributes {dimension_semantics = [#tpu.dimension_semantics<parallel>], iteration_bounds = array<i64: 1>, scalar_prefetch = 0 : i64, scratch_operands = 0 : i64, tpu.core_type = #tpu.core_type<tc>, window_params = [{transform_indices = @transform_0, window_bounds = array<i64: 1, 2048>}, {transform_indices = @transform_1, window_bounds = array<i64: 1, 2048>}]} {
    %c0 = arith.constant 0 : index
    %c0_0 = arith.constant 0 : index
    %0 = vector.load %arg1[%c0, %c0_0] : memref<1x2048xf32, #tpu.memory_space<vmem>>, vector<1x2048xf32>
    %c0_1 = arith.constant 0 : index
    %c0_2 = arith.constant 0 : index
    %1 = vector.load %arg2[%c0_1, %c0_2] : memref<1x2048xf32, #tpu.memory_space<vmem>>, vector<1x2048xf32>
    tpu.vector_store %arg2[%c0_1, %c0_2], %0 {strides = array<i32>} : memref<1x2048xf32, #tpu.memory_space<vmem>>, vector<1x2048xf32>,
    return
  }
  func.func @transform_0(%arg0: i32) -> (i32, i32) {
    %c0_i32 = arith.constant 0 : i32
    %c0_i32_0 = arith.constant 0 : i32
    return %arg0, %c0_i32 : i32, i32
  }
  func.func @transform_1(%arg0: i32) -> (i32, i32) {
    %c0_i32 = arith.constant 0 : i32
    %c0_i32_0 = arith.constant 0 : i32
    return %arg0, %c0_i32 : i32, i32
  }
}

</mosaic_0001>

<bundles_post_ra>
// kernel: _mine_identity_impl.1
= control target key start
LH: loop header
LB: loop body
LE: loop exit
PB: predicated region body
PF: predicated region fallthrough
CT: control target
= control target key end

     0   :  { %s38_s0 = inlined_call_operand.vmem [shape: f32[1,2048], index: 0, kind: input, shape index: {}]   ;;  %s39_s1 = inlined_call_operand.vmem [shape: f32[1,2048], index: 1, kind: output, shape index: {}]  }
   0x1   :  { %v8_v0 = vld [vmem:[%s38_s0] sm:$0xff]  ;;  %v9_v1 = vld [vmem:[%s38_s0 + $0x8] sm:$0xff] }
   0x2   :  { %10 = vst [vmem:[%s39_s1] sm:$0xff] %v8_v0  ;;  %11 = vst [vmem:[%s39_s1 + $0x8] sm:$0xff] %v9_v1 }

</bundles_post_ra>
